<compile_context>
chip_gen: v7x
topology: tpu7x:2x2x1
jax: 0.10.0
libtpu: 0.0.40
codegen_flags: <defaults>
</compile_context>

<pallas_src>
import jax
import jax.numpy as jnp
from jax import lax
from jax.experimental import pallas as pl
from jax.experimental.pallas import tpu as pltpu  # noqa: F401  (TPU backend)

P_DROP = 0.1


def sdpa_kernel(x1_ref, x2_ref, x3_ref, x4_ref, u_ref, o_ref):
    x1 = x1_ref[...]   # (B, M, D)
    x2 = x2_ref[...]   # (B, N, D)
    x3 = x3_ref[...]   # (B, N, P)
    x4 = x4_ref[...]   # (B, M, P)
    u = u_ref[...]     # (B, M, N) uniform[0,1) dropout draws

    # v1 = x1 @ x2^T  -- batched, contraction on the last dim of both operands
    # (no explicit .T, so no XLU transpose before the MXU push).
    v1 = lax.dot_general(
        x1, x2,
        dimension_numbers=(((2,), (2,)), ((0,), (0,))),
        preferred_element_type=jnp.float32,
    )  # (B, M, N)

    # v2 = 0.5 * v1 is computed by the torch module but never used -> skipped.

    # Softmax with deferred normalization: keep the unnormalized exp and fold
    # the row denominator + dropout scale into one multiply after matmul #2.
    m = jnp.max(v1, axis=-1, keepdims=True)
    e = jnp.exp(v1 - m)                           # (B, M, N) unnormalized probs
    denom = jnp.sum(e, axis=-1, keepdims=True)    # (B, M, 1)

    # dropout(v3, p=0.1): keep-mask applied to the unnormalized probabilities.
    keep = (u >= P_DROP).astype(e.dtype)
    e_kept = e * keep

    # v5 (unnormalized) = masked_e @ x3  -- batched MXU matmul.
    v5_un = lax.dot_general(
        e_kept, x3,
        dimension_numbers=(((2,), (1,)), ((0,), (0,))),
        preferred_element_type=jnp.float32,
    )  # (B, M, P)

    # One per-row scale: softmax denominator and dropout 1/(1-p) folded.
    scale = (1.0 / (1.0 - P_DROP)) / denom        # (B, M, 1)
    o_ref[...] = (v5_un * scale + x4).astype(o_ref.dtype)


def model_forward(x1, x2, x3, x4, dropout_uniform):
    B, M, D = x1.shape
    Bb, N, Dd = x2.shape
    _, Nn, P = x3.shape
    assert B == Bb and D == Dd and N == Nn
    assert x4.shape == (B, M, P)
    assert dropout_uniform.shape == (B, M, N)

    # Tiny problem: single kernel invocation, whole arrays as single blocks
    # (default BlockSpecs), no grid -> zero per-step pipeline overhead.
    return pl.pallas_call(
        sdpa_kernel,
        out_shape=jax.ShapeDtypeStruct((B, M, P), jnp.float32),
    )(x1, x2, x3, x4, dropout_uniform)


if __name__ == "__main__":
    # Small, mutually-consistent shapes (see NOTE above).
    B, M, D, N, P = 2, 10, 20, 5, 10
    key = jax.random.PRNGKey(0)
    k1, k2, k3, k4, k5 = jax.random.split(key, 5)
    x1 = jax.random.normal(k1, (B, M, D), dtype=jnp.float32)
    x2 = jax.random.normal(k2, (B, N, D), dtype=jnp.float32)
    x3 = jax.random.normal(k3, (B, N, P), dtype=jnp.float32)
    x4 = jax.random.normal(k4, (B, M, P), dtype=jnp.float32)
    # Dropout randomness (F.dropout defaults to training=True in the module).
    u = jax.random.uniform(k5, (B, M, N), dtype=jnp.float32)

    out = jax.block_until_ready(model_forward(x1, x2, x3, x4, u))
    assert out.shape == (B, M, P)
    assert bool(jnp.all(jnp.isfinite(out)))

    # Exact reference using the same dropout draws.
    attn = jax.nn.softmax(jnp.einsum("bmd,bnd->bmn", x1, x2), axis=-1)
    v4 = jnp.where(u >= P_DROP, attn / (1.0 - P_DROP), 0.0)
    ref = jnp.einsum("bmn,bnp->bmp", v4, x3) + x4
    assert jnp.allclose(out, ref, rtol=1e-4, atol=1e-4)

    print("KERNEL_OK")
</pallas_src>

<mosaic_0001>
module attributes {stable_mosaic.version = 11 : i64} {
  func.func @sdpa_kernel(%arg0: memref<2x10x20xf32, #tpu.memory_space<vmem>>, %arg1: memref<2x5x20xf32, #tpu.memory_space<vmem>>, %arg2: memref<2x5x10xf32, #tpu.memory_space<vmem>>, %arg3: memref<2x10x10xf32, #tpu.memory_space<vmem>>, %arg4: memref<2x10x5xf32, #tpu.memory_space<vmem>>, %arg5: memref<2x10x10xf32, #tpu.memory_space<vmem>>) attributes {dimension_semantics = [], scalar_prefetch = 0 : i64, scratch_operands = 0 : i64, tpu.core_type = #tpu.core_type<tc>} {
    %c0 = arith.constant 0 : index
    %c0_0 = arith.constant 0 : index
    %c0_1 = arith.constant 0 : index
    %0 = vector.load %arg0[%c0, %c0_0, %c0_1] : memref<2x10x20xf32, #tpu.memory_space<vmem>>, vector<2x10x20xf32>
    %c0_2 = arith.constant 0 : index
    %c0_3 = arith.constant 0 : index
    %c0_4 = arith.constant 0 : index
    %1 = vector.load %arg1[%c0_2, %c0_3, %c0_4] : memref<2x5x20xf32, #tpu.memory_space<vmem>>, vector<2x5x20xf32>
    %c0_5 = arith.constant 0 : index
    %c0_6 = arith.constant 0 : index
    %c0_7 = arith.constant 0 : index
    %2 = vector.load %arg2[%c0_5, %c0_6, %c0_7] : memref<2x5x10xf32, #tpu.memory_space<vmem>>, vector<2x5x10xf32>
    %c0_8 = arith.constant 0 : index
    %c0_9 = arith.constant 0 : index
    %c0_10 = arith.constant 0 : index
    %3 = vector.load %arg3[%c0_8, %c0_9, %c0_10] : memref<2x10x10xf32, #tpu.memory_space<vmem>>, vector<2x10x10xf32>
    %c0_11 = arith.constant 0 : index
    %c0_12 = arith.constant 0 : index
    %c0_13 = arith.constant 0 : index
    %4 = vector.load %arg4[%c0_11, %c0_12, %c0_13] : memref<2x10x5xf32, #tpu.memory_space<vmem>>, vector<2x10x5xf32>
    %cst = arith.constant dense<0.000000e+00> : vector<2x10x5xf32>
    %5 = tpu.matmul %0, %1, %cst {dimension_numbers = #tpu.dot_dimension_numbers<[2], [2], [1], [1], [0, 0, 0, 1, 1, 1], [0], [0]>} : vector<2x10x20xf32>, vector<2x5x20xf32>, vector<2x10x5xf32> -> vector<2x10x5xf32>
    %cst_14 = arith.constant dense<0xFF800000> : vector<2x10xf32>
    %6 = vector.multi_reduction <maximumf>, %5, %cst_14 [2] : vector<2x10x5xf32> to vector<2x10xf32>
    %7 = vector.shape_cast %6 : vector<2x10xf32> to vector<2x10x1xf32>
    %8 = vector.broadcast %7 : vector<2x10x1xf32> to vector<2x10x5xf32>
    %9 = arith.subf %5, %8 : vector<2x10x5xf32>
    %10 = math.exp %9 : vector<2x10x5xf32>
    %cst_15 = arith.constant dense<0.000000e+00> : vector<2x10xf32>
    %11 = vector.multi_reduction <add>, %10, %cst_15 [2] : vector<2x10x5xf32> to vector<2x10xf32>
    %12 = vector.shape_cast %11 : vector<2x10xf32> to vector<2x10x1xf32>
    %cst_16 = arith.constant 1.000000e-01 : f32
    %13 = vector.broadcast %cst_16 : f32 to vector<2x10x5xf32>
    %14 = arith.cmpf oge, %4, %13 : vector<2x10x5xf32>
    %15 = arith.extui %14 : vector<2x10x5xi1> to vector<2x10x5xi32>
    %16 = arith.sitofp %15 : vector<2x10x5xi32> to vector<2x10x5xf32>
    %17 = arith.mulf %10, %16 : vector<2x10x5xf32>
    %cst_17 = arith.constant dense<0.000000e+00> : vector<2x10x10xf32>
    %18 = tpu.matmul %17, %2, %cst_17 {dimension_numbers = #tpu.dot_dimension_numbers<[2], [1], [1], [2], [0, 0, 0, 1, 1, 2], [0], [0]>} : vector<2x10x5xf32>, vector<2x5x10xf32>, vector<2x10x10xf32> -> vector<2x10x10xf32>
    %cst_18 = arith.constant 1.11111116 : f32
    %19 = vector.broadcast %cst_18 : f32 to vector<2x10x1xf32>
    %20 = arith.divf %19, %12 : vector<2x10x1xf32>
    %21 = vector.broadcast %20 : vector<2x10x1xf32> to vector<2x10x10xf32>
    %22 = arith.mulf %18, %21 : vector<2x10x10xf32>
    %23 = arith.addf %22, %3 : vector<2x10x10xf32>
    %c0_19 = arith.constant 0 : index
    %c0_20 = arith.constant 0 : index
    %c0_21 = arith.constant 0 : index
    %24 = vector.load %arg5[%c0_19, %c0_20, %c0_21] : memref<2x10x10xf32, #tpu.memory_space<vmem>>, vector<2x10x10xf32>
    tpu.vector_store %arg5[%c0_19, %c0_20, %c0_21], %23 {strides = array<i32>} : memref<2x10x10xf32, #tpu.memory_space<vmem>>, vector<2x10x10xf32>,
    return
  }
}

</mosaic_0001>

<bundles_post_ra>
// kernel: tpu_custom_call.1
= control target key start
LH: loop header
LB: loop body
LE: loop exit
PB: predicated region body
PF: predicated region fallthrough
CT: control target
= control target key end

     0   :  { %vm36_vm0 = vcmask 162816   ;;  %vm209_vm1 = vcmask 33792   ;;  %vm205_vm2 = vcmask 39936   ;;  %vm265_vm3 = vcmask 1044480   ;;  %s624_s1 = inlined_call_operand.vmem [shape: f32[2,5,20], index: 1, kind: input, shape index: {}]   ;;  %s625_s0 = inlined_call_operand.vmem [shape: f32[2,10,20], index: 0, kind: input, shape index: {}]   ;;  %s626_s2 = inlined_call_operand.vmem [shape: f32[2,5,10], index: 2, kind: input, shape index: {}]   ;;  %s627_s4 = inlined_call_operand.vmem [shape: f32[2,10,5], index: 4, kind: input, shape index: {}]   ;;  %s628_s3 = inlined_call_operand.vmem [shape: f32[2,10,10], index: 3, kind: input, shape index: {}]   ;;  %s629_s5 = inlined_call_operand.vmem [shape: f32[2,10,10], index: 5, kind: output, shape index: {}]  }
   0x1   :  { %v24_v0 = vld [vmem:[%s624_s1] sm:$0x1f]  ;;  %v25_v2 = vld [vmem:[%s624_s1 + $0x8] sm:$0x1f]  ;;  %v22_v3 = vld [vmem:[%s625_s0 + $0x10] sm:$0xff]  ;;  %v519_v32 = vmov 0.0  }
   0x2   :  { %v20_v1 = vld [vmem:[%s625_s0] sm:$0xff]  ;;  %482 = vmatprep.subr.msk.mxu0 %vm36_vm0, %v24_v0  ;;  %487 = vmatprep.subr.msk.mxu1 %vm36_vm0, %v25_v2  ;;  %v21_v4 = vld [vmem:[%s625_s0 + $0x8] sm:$0x3]  ;;  %v23_v5 = vld [vmem:[%s625_s0 + $0x18] sm:$0x3]  ;;  %vm446_vm8 = vcmask 74752  }
   0x3   :  { %484 = vmatprep.mubr.msk.f32.mxu0 %vm36_vm0, %v20_v1  ;;  %483 = vmatpush3.xpose.msk.msra.mxu0 %vm36_vm0, %v24_v0  ;;  %v26_v14 = vld [vmem:[%s626_s2] sm:$0x1f]  ;;  %v27_v15 = vld [vmem:[%s626_s2 + $0x8] sm:$0x1f]  ;;  %v34_v30 = vld [vmem:[%s627_s4 + $0x10] sm:$0xff]  ;;  %vm444_vm9 = vcmask 80896  }
   0x4   :  { %488 = vmatpush3.xpose.msk.msra.mxu1 %vm36_vm0, %v25_v2  ;;  %489 = vmatprep.mubr.msk.f32.mxu1 %vm36_vm0, %v22_v3  ;;  %v32_v28 = vld [vmem:[%s627_s4] sm:$0xff]  ;;  %v33_v29 = vld [vmem:[%s627_s4 + $0x8] sm:$0x3]  ;;  %v35_v31 = vld [vmem:[%s627_s4 + $0x18] sm:$0x3] }
   0x5   :  { %492 = vmatprep.subr.msk.mxu0 %vm265_vm3, %v26_v14  ;;  %497 = vmatprep.subr.msk.mxu1 %vm265_vm3, %v27_v15  ;;  %vm243_vm4 = vcmp.ge.f32.partialorder %v32_v28, 0.1  ;;  %vm244_vm5 = vcmp.ge.f32.partialorder %v33_v29, 0.1  ;;  %vm245_vm6 = vcmp.ge.f32.partialorder %v34_v30, 0.1 }
   0x6   :  { %485 = vmatmul.mubr.msk.f32.vlgmr.msra.gmra.mrb[0].mxu0 %vm36_vm0, %v21_v4  ;;  %v460_v33 = vsel %vm243_vm4, 1.0, %v519_v32  ;;  %v461_v35 = vsel %vm244_vm5, 1.0, %v519_v32  ;;  %vm246_vm7 = vcmp.ge.f32.partialorder %v35_v31, 0.1  ;;  %v462_v41 = vsel %vm245_vm6, 1.0, %v519_v32  ;;  %v28_v62 = vld [vmem:[%s628_s3] sm:$0xff] }
   0x7   :  { %490 = vmatmul.mubr.msk.f32.vlgmr.msra.gmra.mrb[0].mxu1 %vm36_vm0, %v23_v5  ;;  %493 = vmatpush3.msk.msra.mxu0 %vm265_vm3, %v26_v14  ;;  %v463_v43 = vsel %vm246_vm7, 1.0, %v519_v32  ;;  %v29_v57 = vld [vmem:[%s628_s3 + $0x8] sm:$0x3]  ;;  %v31_v4 = vld [vmem:[%s628_s3 + $0x18] sm:$0x3] }
   0x8   :  { %498 = vmatpush3.msk.msra.mxu1 %vm265_vm3, %v27_v15 }
  0xd9   :  { %v486_v6 = vpop.f32.mrb[0].mxu0 }
  0xda   :  { %v112_v7 = vpop.f32.mrb[1].mxu0  ;;  %v210_v8 = vsel %vm209_vm1, %v486_v6, -inf  ;;  %v491_v9 = vpop.f32.mrb[0].mxu1 }
  0xdb   :  { %211 = vmax.xlane.f32.xlu1 %v210_v8  ;;  %v206_v10 = vsel %vm205_vm2, %v112_v7, -inf  ;;  %v196_v11 = vpop.f32.mrb[1].mxu1  ;;  %v216_v12 = vsel %vm209_vm1, %v491_v9, -inf  ;;  %v30_v8 = vld [vmem:[%s628_s3 + $0x10] sm:$0xff] }
  0xdc   :  { %207 = vmax.xlane.f32.xlu0 %v206_v10  ;;  %v213_v13 = vsel %vm205_vm2, %v196_v11, -inf }
  0xdf   :  { %217 = vmax.xlane.f32.xlu1 %v216_v12 }
  0xe0   :  { %214 = vmax.xlane.f32.xlu0 %v213_v13 }
 0x168   :  { %v212_v16 = vpop.xlane.xlu1 %211 }
 0x169   :  { %v220_v17 = vsub.f32 %v486_v6, %v212_v16  ;;  %v208_v18 = vpop.xlane.xlu0 %207 }
 0x16a   :  { %v219_v19 = vsub.f32 %v112_v7, %v208_v18 }
 0x16b   :  { %v225_v20 = vmul.f32 1.442695, %v220_v17 }
 0x16c   :  { %v223_v21 = vmul.f32 1.442695, %v219_v19  ;;  %v218_v22 = vpop.xlane.xlu1 %217 }
 0x16d   :  { %503 = vpow2.f32 %v225_v20  ;;  %v222_v23 = vsub.f32 %v491_v9, %v218_v22  ;;  %v215_v24 = vpop.xlane.xlu0 %214 }
 0x16e   :  { %505 = vpow2.f32 %v223_v21  ;;  %v221_v25 = vsub.f32 %v196_v11, %v215_v24 }
 0x16f   :  { %v229_v26 = vmul.f32 1.442695, %v222_v23 }
 0x170   :  { %v227_v27 = vmul.f32 1.442695, %v221_v25 }
 0x171   :  { %507 = vpow2.f32 %v229_v26 }
 0x172   :  { %509 = vpow2.f32 %v227_v27 }
 0x177   :  { %v504_v34 = vpop.eup %503 }
 0x178   :  { %v506_v36 = vpop.eup %505  ;;  %v234_v37 = vsel %vm209_vm1, %v504_v34, 0.0  ;;  %v256_v40 = vmul.f32 %v504_v34, %v461_v35 }
 0x179   :  { %235 = vadd.xlane.f32.xlu1 %v234_v37  ;;  %v231_v38 = vsel %vm205_vm2, %v506_v36, 0.0  ;;  %v255_v39 = vmul.f32 %v506_v36, %v460_v33 }
 0x17a   :  { %232 = vadd.xlane.f32.xlu0 %v231_v38 }
 0x17b   :  { %v508_v42 = vpop.eup %507  ;;  %494 = vmatprep.mubr.msk.f32.mxu0 %vm205_vm2, %v255_v39 }
 0x17c   :  { %v510_v44 = vpop.eup %509  ;;  %495 = vmatmul.mubr.msk.f32.vlgmr.msra.gmra.mrb[2].mxu0 %vm205_vm2, %v256_v40  ;;  %v240_v45 = vsel %vm209_vm1, %v508_v42, 0.0  ;;  %v258_v48 = vmul.f32 %v508_v42, %v463_v43 }
 0x17d   :  { %241 = vadd.xlane.f32.xlu1 %v240_v45  ;;  %v237_v46 = vsel %vm205_vm2, %v510_v44, 0.0  ;;  %v257_v47 = vmul.f32 %v510_v44, %v462_v41 }
 0x17e   :  { %238 = vadd.xlane.f32.xlu0 %v237_v46 }
 0x17f   :  { %499 = vmatprep.mubr.msk.f32.mxu1 %vm205_vm2, %v257_v47 }
 0x180   :  { %500 = vmatmul.mubr.msk.f32.vlgmr.msra.gmra.mrb[2].mxu1 %vm205_vm2, %v258_v48 }
 0x206   :  { %v236_v49 = vpop.xlane.xlu1 %235 }
 0x207   :  { %v233_v50 = vpop.xlane.xlu0 %232  ;;  %511 = vrcp.f32 %v236_v49 }
 0x208   :  { %513 = vrcp.f32 %v233_v50 }
 0x20a   :  { %v242_v51 = vpop.xlane.xlu1 %241 }
 0x20b   :  { %v239_v52 = vpop.xlane.xlu0 %238  ;;  %515 = vrcp.f32 %v242_v51 }
 0x20c   :  { %517 = vrcp.f32 %v239_v52 }
 0x211   :  { %v512_v53 = vpop.eup %511 }
 0x212   :  { %v514_v54 = vpop.eup %513  ;;  %v431_v55 = vmul.f32 1.1111112, %v512_v53 }
 0x213   :  { %v429_v59 = vmul.f32 1.1111112, %v514_v54 }
 0x215   :  { %v516_v56 = vpop.eup %515 }
 0x216   :  { %v518_v60 = vpop.eup %517  ;;  %v435_v2 = vmul.f32 1.1111112, %v516_v56 }
 0x217   :  { %v433_v6 = vmul.f32 1.1111112, %v518_v60 }
 0x24f   :  { %v496_v58 = vpop.f32.mrb[2].mxu0 }
 0x250   :  { %v437_v61 = vmul.f32 %v496_v58, %v431_v55  ;;  %v335_v63 = vpop.f32.mrb[3].mxu0 }
 0x251   :  { %v436_v0 = vmul.f32 %v429_v59, %v335_v63 }
 0x252   :  { %v441_v1 = vadd.f32 %v437_v61, %v29_v57 }
 0x253   :  { %v440_v3 = vadd.f32 %v436_v0, %v28_v62  ;;  %v501_v5 = vpop.f32.mrb[2].mxu1 }
 0x254   :  { %447 = vst.msk [vmem:[%s629_s5 + $0x8] sm:$0x3] %vm446_vm8, %v441_v1  ;;  %v439_v7 = vmul.f32 %v501_v5, %v435_v2  ;;  %v419_v9 = vpop.f32.mrb[3].mxu1 }
 0x255   :  { %445 = vst.msk [vmem:[%s629_s5] sm:$0xff] %vm444_vm9, %v440_v3  ;;  %v438_v10 = vmul.f32 %v433_v6, %v419_v9 }
 0x256   :  { %v443_v11 = vadd.f32 %v439_v7, %v31_v4 }
 0x257   :  { %v442_v12 = vadd.f32 %v438_v10, %v30_v8 }
 0x258   :  { %449 = vst.msk [vmem:[%s629_s5 + $0x18] sm:$0x3] %vm446_vm8, %v443_v11 }
 0x259   :  { %448 = vst.msk [vmem:[%s629_s5 + $0x10] sm:$0xff] %vm444_vm9, %v442_v12 }

</bundles_post_ra>
